<compile_context>
chip_gen: v6e
topology: v6e:2x2x1
jax: 0.10.0
libtpu: 0.0.40
codegen_flags: <defaults>
</compile_context>

<pallas_src>
import jax
import jax.numpy as jnp
from jax import lax
from jax.experimental import pallas as pl
from jax.experimental.pallas import tpu as pltpu


def _round_up(x, m):
    return (x + m - 1) // m * m


# ----------------------------- Pallas kernels -----------------------------

def _conv_block_kernel(x_ref, w_ref, bss_ref, o_ref):
    # x: [tile_m, Kp] bf16 im2col rows; w: [Kp, Co] bf16; bss: [3, Co] f32.
    y = jnp.dot(x_ref[...], w_ref[...], preferred_element_type=jnp.float32)
    y = y + bss_ref[0:1, :]                               # conv bias (f32)
    y = jnp.where(y >= 0.0, y, 0.2 * y)                   # LeakyReLU(0.2)
    # TODO(synk): Dropout2d(0.25) omitted — eval-mode identity (train RNG not reproduced).
    o_ref[...] = y * bss_ref[1:2, :] + bss_ref[2:3, :]    # folded eval BatchNorm2d(eps=0.8)


def _linear_kernel(x_ref, w_ref, b_ref, o_ref):
    o_ref[...] = (
        jnp.dot(x_ref[...], w_ref[...], preferred_element_type=jnp.float32)
        + b_ref[...]
    )


# ------------------------------ layer wrappers -----------------------------

def conv_block(x_nhwc, w_oihw, b, scale, shift, *, tile_m_max=512):
    """Conv2d(kernel=3, stride=2, pad=1) + LeakyReLU(0.2) + folded eval BN."""
    N, H, W, Cin = x_nhwc.shape
    Co = w_oihw.shape[0]
    # PyTorch Conv2d(k=3, s=2, p=1) gives (H+1)//2; H//2 only matches for even H.
    assert H % 2 == 0 and W % 2 == 0, "odd spatial sizes not supported"
    Ho, Wo = H // 2, W // 2

    M = N * Ho * Wo
    K = 9 * Cin
    Kp = _round_up(K, 128)                       # lane-aligned contraction dim
    tile_m = min(tile_m_max, _round_up(M, 8))    # sublane-aligned row tile
    Mp = _round_up(M, tile_m)

    # im2col (glue, fused into the surrounding jit): pad=1, 9 strided taps in
    # (kh, kw, ci) order.
    # TODO(synk): build the 9 taps in-kernel from a padded NHWC block to avoid the
    # 9x-expanded X HBM round-trip (matters at large batch; negligible at this size).
    xp = jnp.pad(x_nhwc, ((0, 0), (1, 1), (1, 1), (0, 0)))
    patches = [xp[:, kh:kh + 2 * Ho:2, kw:kw + 2 * Wo:2, :]
               for kh in range(3) for kw in range(3)]
    X = jnp.concatenate(patches, axis=-1).reshape(M, K)
    X = jnp.pad(X, ((0, Mp - M), (0, Kp - K))).astype(jnp.bfloat16)

    # PyTorch OIHW -> [(kh, kw, ci), co]; zero-fill the padded K rows.
    Wm = jnp.transpose(w_oihw, (2, 3, 1, 0)).reshape(K, Co)
    Wm = jnp.pad(Wm, ((0, Kp - K), (0, 0))).astype(jnp.bfloat16)

    # Stack bias / BN scale / BN shift into one small resident VMEM input.
    bss = jnp.stack([b, scale, shift], axis=0)   # (3, Co) f32

    grid = (Mp // tile_m,)
    out = pl.pallas_call(
        _conv_block_kernel,
        out_shape=jax.ShapeDtypeStruct((Mp, Co), jnp.float32),
        grid=grid,
        in_specs=[
            pl.BlockSpec((tile_m, Kp), lambda i: (i, 0)),   # X row tiles, pipelined
            pl.BlockSpec((Kp, Co), lambda i: (0, 0)),       # weights stay resident
            pl.BlockSpec((3, Co), lambda i: (0, 0)),        # bias/scale/shift resident
        ],
        out_specs=pl.BlockSpec((tile_m, Co), lambda i: (i, 0)),
        compiler_params=pltpu.CompilerParams(
            dimension_semantics=("parallel",),              # 2 TCs on v7x
            vmem_limit_bytes=32 * 1024 * 1024,              # fits v5e/v6e/v7x budgets
        ),
        cost_estimate=pl.CostEstimate(
            flops=2 * Mp * Kp * Co,
            transcendentals=0,
            bytes_accessed=Mp * Kp * 2 + Kp * Co * 2 + Mp * Co * 4,
        ),
    )(X, Wm, bss)
    return out[:M].reshape(N, Ho, Wo, Co)


def linear(x, w, b):
    # x: [N, F] f32, w: [F, 1] f32, b: [1] f32 — tiny, single un-gridded call.
    return pl.pallas_call(
        _linear_kernel,
        out_shape=jax.ShapeDtypeStruct((x.shape[0], w.shape[1]), jnp.float32),
        in_specs=[pl.BlockSpec(memory_space=pltpu.MemorySpace.VMEM)] * 3,
        out_specs=pl.BlockSpec(memory_space=pltpu.MemorySpace.VMEM),
    )(x, w, b.reshape(1, -1))


# ------------------------------ parameters ---------------------------------

def init_params(key, img_size, channels):
    """Deterministic synthetic init mirroring the PyTorch module's shapes."""
    chans = [channels, 16, 32, 64, 128]
    keys = jax.random.split(key, 10)
    ki = 0
    blocks = []
    bn_eps = 0.8
    for i in range(4):
        cin, cout = chans[i], chans[i + 1]
        bound = 1.0 / jnp.sqrt(float(cin * 9))
        w = jax.random.uniform(keys[ki], (cout, cin, 3, 3), jnp.float32, -bound, bound)
        ki += 1
        b = jax.random.uniform(keys[ki], (cout,), jnp.float32, -bound, bound)
        ki += 1
        if i == 0:
            # bn=False block: identity affine.
            scale = jnp.ones((cout,), jnp.float32)
            shift = jnp.zeros((cout,), jnp.float32)
        else:
            # Default-initialized BatchNorm2d(cout, eps=0.8), eval mode:
            # gamma=1, beta=0, running_mean=0, running_var=1.
            gamma = jnp.ones((cout,), jnp.float32)
            beta = jnp.zeros((cout,), jnp.float32)
            rmean = jnp.zeros((cout,), jnp.float32)
            rvar = jnp.ones((cout,), jnp.float32)
            scale = gamma / jnp.sqrt(rvar + bn_eps)
            shift = beta - rmean * scale
        blocks.append({"w": w, "b": b, "scale": scale, "shift": shift})

    ds_size = img_size // 2 ** 4
    feat = 128 * ds_size ** 2
    lbound = 1.0 / jnp.sqrt(float(feat))
    lin_w = jax.random.uniform(keys[ki], (feat, 1), jnp.float32, -lbound, lbound)
    ki += 1
    lin_b = jax.random.uniform(keys[ki], (1,), jnp.float32, -lbound, lbound)
    # Fold the final NHWC->NCHW transpose + flatten into the linear weight by
    # permuting its rows once here (NCHW-flat order -> NHWC-flat order).
    lin_w_nhwc = jnp.transpose(
        lin_w.reshape(128, ds_size, ds_size, 1), (1, 2, 0, 3)
    ).reshape(feat, 1)
    return {"blocks": blocks, "lin_w": lin_w, "lin_w_nhwc": lin_w_nhwc,
            "lin_b": lin_b}


# ------------------------------ forward pass --------------------------------

@jax.jit
def discriminator_forward(params, img_nchw):
    x = jnp.transpose(img_nchw, (0, 2, 3, 1))  # NCHW -> NHWC
    for blk in params["blocks"]:
        x = conv_block(x, blk["w"], blk["b"], blk["scale"], blk["shift"])
    # Flatten directly in NHWC order; lin_w rows were permuted at init so this
    # matches PyTorch's NCHW out.view(N, -1) @ adv_layer.weight.T.
    flat = x.reshape(x.shape[0], -1)
    return linear(flat, params["lin_w_nhwc"], params["lin_b"])


# --------------------------- pure-JAX reference ------------------------------

def _reference_forward(params, img_nchw):
    x = img_nchw
    for blk in params["blocks"]:
        x = lax.conv_general_dilated(
            x, blk["w"], window_strides=(2, 2), padding=((1, 1), (1, 1)),
            dimension_numbers=("NCHW", "OIHW", "NCHW"))
        x = x + blk["b"][None, :, None, None]
        x = jnp.where(x >= 0.0, x, 0.2 * x)
        x = x * blk["scale"][None, :, None, None] + blk["shift"][None, :, None, None]
    flat = x.reshape(x.shape[0], -1)
    return flat @ params["lin_w"] + params["lin_b"][None, :]


if __name__ == "__main__":
    img_size, channels, batch = 16, 4, 2
    key = jax.random.PRNGKey(0)
    k_img, k_par = jax.random.split(key)

    img = jax.random.normal(k_img, (batch, channels, img_size, img_size), jnp.float32)
    params = init_params(k_par, img_size, channels)

    validity = discriminator_forward(params, img)
    jax.block_until_ready(validity)
    assert validity.shape == (batch, 1), validity.shape
    assert validity.dtype == jnp.float32

    # Loose tolerance: matmul operands are bf16 (f32 accumulation/epilogue).
    ref = _reference_forward(params, img)
    err = float(jnp.max(jnp.abs(validity - ref)))
    assert err < 5e-2, f"mismatch vs reference: {err}"
    print("KERNEL_OK")
</pallas_src>

<mosaic_0001>
module attributes {stable_mosaic.version = 11 : i64} {
  func.func @_conv_block_kernel(%arg0: i32, %arg1: memref<128x128xbf16, #tpu.memory_space<vmem>>, %arg2: memref<128x16xbf16, #tpu.memory_space<vmem>>, %arg3: memref<3x16xf32, #tpu.memory_space<vmem>>, %arg4: memref<128x16xf32, #tpu.memory_space<vmem>>) attributes {dimension_semantics = [#tpu.dimension_semantics<parallel>], iteration_bounds = array<i64: 1>, scalar_prefetch = 0 : i64, scratch_operands = 0 : i64, tpu.core_type = #tpu.core_type<tc>, window_params = [{transform_indices = @transform_0, window_bounds = array<i64: 128, 128>}, {pipeline_mode = #tpu.pipeline_mode<synchronous>, transform_indices = @transform_1, window_bounds = array<i64: 128, 16>}, {pipeline_mode = #tpu.pipeline_mode<synchronous>, transform_indices = @transform_2, window_bounds = array<i64: 3, 16>}, {transform_indices = @transform_3, window_bounds = array<i64: 128, 16>}]} {
    %c0 = arith.constant 0 : index
    %c0_0 = arith.constant 0 : index
    %0 = vector.load %arg1[%c0, %c0_0] : memref<128x128xbf16, #tpu.memory_space<vmem>>, vector<128x128xbf16>
    %c0_1 = arith.constant 0 : index
    %c0_2 = arith.constant 0 : index
    %1 = vector.load %arg2[%c0_1, %c0_2] : memref<128x16xbf16, #tpu.memory_space<vmem>>, vector<128x16xbf16>
    %cst = arith.constant dense<0.000000e+00> : vector<128x16xf32>
    %2 = tpu.matmul %0, %1, %cst {dimension_numbers = #tpu.dot_dimension_numbers<[1], [0], [0], [1], [0, 0, 1, 1], [], []>} : vector<128x128xbf16>, vector<128x16xbf16>, vector<128x16xf32> -> vector<128x16xf32>
    %c0_3 = arith.constant 0 : index
    %c0_4 = arith.constant 0 : index
    %3 = vector.load %arg3[%c0_3, %c0_4] : memref<3x16xf32, #tpu.memory_space<vmem>>, vector<1x16xf32>
    %4 = vector.broadcast %3 : vector<1x16xf32> to vector<128x16xf32>
    %5 = arith.addf %2, %4 : vector<128x16xf32>
    %cst_5 = arith.constant 0.000000e+00 : f32
    %6 = vector.broadcast %cst_5 : f32 to vector<128x16xf32>
    %7 = arith.cmpf oge, %5, %6 : vector<128x16xf32>
    %cst_6 = arith.constant 2.000000e-01 : f32
    %8 = vector.broadcast %cst_6 : f32 to vector<128x16xf32>
    %9 = arith.mulf %8, %5 : vector<128x16xf32>
    %10 = arith.select %7, %5, %9 : vector<128x16xi1>, vector<128x16xf32>
    %c1 = arith.constant 1 : index
    %c0_7 = arith.constant 0 : index
    %11 = vector.load %arg3[%c1, %c0_7] : memref<3x16xf32, #tpu.memory_space<vmem>>, vector<1x16xf32>
    %12 = vector.broadcast %11 : vector<1x16xf32> to vector<128x16xf32>
    %13 = arith.mulf %10, %12 : vector<128x16xf32>
    %c2 = arith.constant 2 : index
    %c0_8 = arith.constant 0 : index
    %14 = vector.load %arg3[%c2, %c0_8] : memref<3x16xf32, #tpu.memory_space<vmem>>, vector<1x16xf32>
    %15 = vector.broadcast %14 : vector<1x16xf32> to vector<128x16xf32>
    %16 = arith.addf %13, %15 : vector<128x16xf32>
    %c0_9 = arith.constant 0 : index
    %c0_10 = arith.constant 0 : index
    %17 = vector.load %arg4[%c0_9, %c0_10] : memref<128x16xf32, #tpu.memory_space<vmem>>, vector<128x16xf32>
    tpu.vector_store %arg4[%c0_9, %c0_10], %16 {strides = array<i32>} : memref<128x16xf32, #tpu.memory_space<vmem>>, vector<128x16xf32>,
    return
  }
  func.func @transform_0(%arg0: i32) -> (i32, i32) {
    %c0_i32 = arith.constant 0 : i32
    %c0_i32_0 = arith.constant 0 : i32
    return %arg0, %c0_i32 : i32, i32
  }
  func.func @transform_1(%arg0: i32) -> (i32, i32) {
    %c0_i32 = arith.constant 0 : i32
    %c0_i32_0 = arith.constant 0 : i32
    %c0_i32_1 = arith.constant 0 : i32
    return %c0_i32, %c0_i32_0 : i32, i32
  }
  func.func @transform_2(%arg0: i32) -> (i32, i32) {
    %c0_i32 = arith.constant 0 : i32
    %c0_i32_0 = arith.constant 0 : i32
    %c0_i32_1 = arith.constant 0 : i32
    return %c0_i32, %c0_i32_0 : i32, i32
  }
  func.func @transform_3(%arg0: i32) -> (i32, i32) {
    %c0_i32 = arith.constant 0 : i32
    %c0_i32_0 = arith.constant 0 : i32
    return %arg0, %c0_i32 : i32, i32
  }
}

module attributes {stable_mosaic.version = 11 : i64} {
  func.func @_conv_block_kernel(%arg0: i32, %arg1: memref<32x256xbf16, #tpu.memory_space<vmem>>, %arg2: memref<256x32xbf16, #tpu.memory_space<vmem>>, %arg3: memref<3x32xf32, #tpu.memory_space<vmem>>, %arg4: memref<32x32xf32, #tpu.memory_space<vmem>>) attributes {dimension_semantics = [#tpu.dimension_semantics<parallel>], iteration_bounds = array<i64: 1>, scalar_prefetch = 0 : i64, scratch_operands = 0 : i64, tpu.core_type = #tpu.core_type<tc>, window_params = [{transform_indices = @transform_0, window_bounds = array<i64: 32, 256>}, {pipeline_mode = #tpu.pipeline_mode<synchronous>, transform_indices = @transform_1, window_bounds = array<i64: 256, 32>}, {pipeline_mode = #tpu.pipeline_mode<synchronous>, transform_indices = @transform_2, window_bounds = array<i64: 3, 32>}, {transform_indices = @transform_3, window_bounds = array<i64: 32, 32>}]} {
    %c0 = arith.constant 0 : index
    %c0_0 = arith.constant 0 : index
    %0 = vector.load %arg1[%c0, %c0_0] : memref<32x256xbf16, #tpu.memory_space<vmem>>, vector<32x256xbf16>
    %c0_1 = arith.constant 0 : index
    %c0_2 = arith.constant 0 : index
    %1 = vector.load %arg2[%c0_1, %c0_2] : memref<256x32xbf16, #tpu.memory_space<vmem>>, vector<256x32xbf16>
    %cst = arith.constant dense<0.000000e+00> : vector<32x32xf32>
    %2 = tpu.matmul %0, %1, %cst {dimension_numbers = #tpu.dot_dimension_numbers<[1], [0], [0], [1], [0, 0, 1, 1], [], []>} : vector<32x256xbf16>, vector<256x32xbf16>, vector<32x32xf32> -> vector<32x32xf32>
    %c0_3 = arith.constant 0 : index
    %c0_4 = arith.constant 0 : index
    %3 = vector.load %arg3[%c0_3, %c0_4] : memref<3x32xf32, #tpu.memory_space<vmem>>, vector<1x32xf32>
    %4 = vector.broadcast %3 : vector<1x32xf32> to vector<32x32xf32>
    %5 = arith.addf %2, %4 : vector<32x32xf32>
    %cst_5 = arith.constant 0.000000e+00 : f32
    %6 = vector.broadcast %cst_5 : f32 to vector<32x32xf32>
    %7 = arith.cmpf oge, %5, %6 : vector<32x32xf32>
    %cst_6 = arith.constant 2.000000e-01 : f32
    %8 = vector.broadcast %cst_6 : f32 to vector<32x32xf32>
    %9 = arith.mulf %8, %5 : vector<32x32xf32>
    %10 = arith.select %7, %5, %9 : vector<32x32xi1>, vector<32x32xf32>
    %c1 = arith.constant 1 : index
    %c0_7 = arith.constant 0 : index
    %11 = vector.load %arg3[%c1, %c0_7] : memref<3x32xf32, #tpu.memory_space<vmem>>, vector<1x32xf32>
    %12 = vector.broadcast %11 : vector<1x32xf32> to vector<32x32xf32>
    %13 = arith.mulf %10, %12 : vector<32x32xf32>
    %c2 = arith.constant 2 : index
    %c0_8 = arith.constant 0 : index
    %14 = vector.load %arg3[%c2, %c0_8] : memref<3x32xf32, #tpu.memory_space<vmem>>, vector<1x32xf32>
    %15 = vector.broadcast %14 : vector<1x32xf32> to vector<32x32xf32>
    %16 = arith.addf %13, %15 : vector<32x32xf32>
    %c0_9 = arith.constant 0 : index
    %c0_10 = arith.constant 0 : index
    %17 = vector.load %arg4[%c0_9, %c0_10] : memref<32x32xf32, #tpu.memory_space<vmem>>, vector<32x32xf32>
    tpu.vector_store %arg4[%c0_9, %c0_10], %16 {strides = array<i32>} : memref<32x32xf32, #tpu.memory_space<vmem>>, vector<32x32xf32>,
    return
  }
  func.func @transform_0(%arg0: i32) -> (i32, i32) {
    %c0_i32 = arith.constant 0 : i32
    %c0_i32_0 = arith.constant 0 : i32
    return %arg0, %c0_i32 : i32, i32
  }
  func.func @transform_1(%arg0: i32) -> (i32, i32) {
    %c0_i32 = arith.constant 0 : i32
    %c0_i32_0 = arith.constant 0 : i32
    %c0_i32_1 = arith.constant 0 : i32
    return %c0_i32, %c0_i32_0 : i32, i32
  }
  func.func @transform_2(%arg0: i32) -> (i32, i32) {
    %c0_i32 = arith.constant 0 : i32
    %c0_i32_0 = arith.constant 0 : i32
    %c0_i32_1 = arith.constant 0 : i32
    return %c0_i32, %c0_i32_0 : i32, i32
  }
  func.func @transform_3(%arg0: i32) -> (i32, i32) {
    %c0_i32 = arith.constant 0 : i32
    %c0_i32_0 = arith.constant 0 : i32
    return %arg0, %c0_i32 : i32, i32
  }
}

module attributes {stable_mosaic.version = 11 : i64} {
  func.func @_conv_block_kernel(%arg0: i32, %arg1: memref<8x384xbf16, #tpu.memory_space<vmem>>, %arg2: memref<384x64xbf16, #tpu.memory_space<vmem>>, %arg3: memref<3x64xf32, #tpu.memory_space<vmem>>, %arg4: memref<8x64xf32, #tpu.memory_space<vmem>>) attributes {dimension_semantics = [#tpu.dimension_semantics<parallel>], iteration_bounds = array<i64: 1>, scalar_prefetch = 0 : i64, scratch_operands = 0 : i64, tpu.core_type = #tpu.core_type<tc>, window_params = [{transform_indices = @transform_0, window_bounds = array<i64: 8, 384>}, {pipeline_mode = #tpu.pipeline_mode<synchronous>, transform_indices = @transform_1, window_bounds = array<i64: 384, 64>}, {pipeline_mode = #tpu.pipeline_mode<synchronous>, transform_indices = @transform_2, window_bounds = array<i64: 3, 64>}, {transform_indices = @transform_3, window_bounds = array<i64: 8, 64>}]} {
    %c0 = arith.constant 0 : index
    %c0_0 = arith.constant 0 : index
    %0 = vector.load %arg1[%c0, %c0_0] : memref<8x384xbf16, #tpu.memory_space<vmem>>, vector<8x384xbf16>
    %c0_1 = arith.constant 0 : index
    %c0_2 = arith.constant 0 : index
    %1 = vector.load %arg2[%c0_1, %c0_2] : memref<384x64xbf16, #tpu.memory_space<vmem>>, vector<384x64xbf16>
    %cst = arith.constant dense<0.000000e+00> : vector<8x64xf32>
    %2 = tpu.matmul %0, %1, %cst {dimension_numbers = #tpu.dot_dimension_numbers<[1], [0], [0], [1], [0, 0, 1, 1], [], []>} : vector<8x384xbf16>, vector<384x64xbf16>, vector<8x64xf32> -> vector<8x64xf32>
    %c0_3 = arith.constant 0 : index
    %c0_4 = arith.constant 0 : index
    %3 = vector.load %arg3[%c0_3, %c0_4] : memref<3x64xf32, #tpu.memory_space<vmem>>, vector<1x64xf32>
    %4 = vector.broadcast %3 : vector<1x64xf32> to vector<8x64xf32>
    %5 = arith.addf %2, %4 : vector<8x64xf32>
    %cst_5 = arith.constant 0.000000e+00 : f32
    %6 = vector.broadcast %cst_5 : f32 to vector<8x64xf32>
    %7 = arith.cmpf oge, %5, %6 : vector<8x64xf32>
    %cst_6 = arith.constant 2.000000e-01 : f32
    %8 = vector.broadcast %cst_6 : f32 to vector<8x64xf32>
    %9 = arith.mulf %8, %5 : vector<8x64xf32>
    %10 = arith.select %7, %5, %9 : vector<8x64xi1>, vector<8x64xf32>
    %c1 = arith.constant 1 : index
    %c0_7 = arith.constant 0 : index
    %11 = vector.load %arg3[%c1, %c0_7] : memref<3x64xf32, #tpu.memory_space<vmem>>, vector<1x64xf32>
    %12 = vector.broadcast %11 : vector<1x64xf32> to vector<8x64xf32>
    %13 = arith.mulf %10, %12 : vector<8x64xf32>
    %c2 = arith.constant 2 : index
    %c0_8 = arith.constant 0 : index
    %14 = vector.load %arg3[%c2, %c0_8] : memref<3x64xf32, #tpu.memory_space<vmem>>, vector<1x64xf32>
    %15 = vector.broadcast %14 : vector<1x64xf32> to vector<8x64xf32>
    %16 = arith.addf %13, %15 : vector<8x64xf32>
    %c0_9 = arith.constant 0 : index
    %c0_10 = arith.constant 0 : index
    %17 = vector.load %arg4[%c0_9, %c0_10] : memref<8x64xf32, #tpu.memory_space<vmem>>, vector<8x64xf32>
    tpu.vector_store %arg4[%c0_9, %c0_10], %16 {strides = array<i32>} : memref<8x64xf32, #tpu.memory_space<vmem>>, vector<8x64xf32>,
    return
  }
  func.func @transform_0(%arg0: i32) -> (i32, i32) {
    %c0_i32 = arith.constant 0 : i32
    %c0_i32_0 = arith.constant 0 : i32
    return %arg0, %c0_i32 : i32, i32
  }
  func.func @transform_1(%arg0: i32) -> (i32, i32) {
    %c0_i32 = arith.constant 0 : i32
    %c0_i32_0 = arith.constant 0 : i32
    %c0_i32_1 = arith.constant 0 : i32
    return %c0_i32, %c0_i32_0 : i32, i32
  }
  func.func @transform_2(%arg0: i32) -> (i32, i32) {
    %c0_i32 = arith.constant 0 : i32
    %c0_i32_0 = arith.constant 0 : i32
    %c0_i32_1 = arith.constant 0 : i32
    return %c0_i32, %c0_i32_0 : i32, i32
  }
  func.func @transform_3(%arg0: i32) -> (i32, i32) {
    %c0_i32 = arith.constant 0 : i32
    %c0_i32_0 = arith.constant 0 : i32
    return %arg0, %c0_i32 : i32, i32
  }
}

module attributes {stable_mosaic.version = 11 : i64} {
  func.func @_conv_block_kernel(%arg0: i32, %arg1: memref<8x640xbf16, #tpu.memory_space<vmem>>, %arg2: memref<640x128xbf16, #tpu.memory_space<vmem>>, %arg3: memref<3x128xf32, #tpu.memory_space<vmem>>, %arg4: memref<8x128xf32, #tpu.memory_space<vmem>>) attributes {dimension_semantics = [#tpu.dimension_semantics<parallel>], iteration_bounds = array<i64: 1>, scalar_prefetch = 0 : i64, scratch_operands = 0 : i64, tpu.core_type = #tpu.core_type<tc>, window_params = [{transform_indices = @transform_0, window_bounds = array<i64: 8, 640>}, {pipeline_mode = #tpu.pipeline_mode<synchronous>, transform_indices = @transform_1, window_bounds = array<i64: 640, 128>}, {pipeline_mode = #tpu.pipeline_mode<synchronous>, transform_indices = @transform_2, window_bounds = array<i64: 3, 128>}, {transform_indices = @transform_3, window_bounds = array<i64: 8, 128>}]} {
    %c0 = arith.constant 0 : index
    %c0_0 = arith.constant 0 : index
    %0 = vector.load %arg1[%c0, %c0_0] : memref<8x640xbf16, #tpu.memory_space<vmem>>, vector<8x640xbf16>
    %c0_1 = arith.constant 0 : index
    %c0_2 = arith.constant 0 : index
    %1 = vector.load %arg2[%c0_1, %c0_2] : memref<640x128xbf16, #tpu.memory_space<vmem>>, vector<640x128xbf16>
    %cst = arith.constant dense<0.000000e+00> : vector<8x128xf32>
    %2 = tpu.matmul %0, %1, %cst {dimension_numbers = #tpu.dot_dimension_numbers<[1], [0], [0], [1], [0, 0, 1, 1], [], []>} : vector<8x640xbf16>, vector<640x128xbf16>, vector<8x128xf32> -> vector<8x128xf32>
    %c0_3 = arith.constant 0 : index
    %c0_4 = arith.constant 0 : index
    %3 = vector.load %arg3[%c0_3, %c0_4] : memref<3x128xf32, #tpu.memory_space<vmem>>, vector<1x128xf32>
    %4 = vector.broadcast %3 : vector<1x128xf32> to vector<8x128xf32>
    %5 = arith.addf %2, %4 : vector<8x128xf32>
    %cst_5 = arith.constant 0.000000e+00 : f32
    %6 = vector.broadcast %cst_5 : f32 to vector<8x128xf32>
    %7 = arith.cmpf oge, %5, %6 : vector<8x128xf32>
    %cst_6 = arith.constant 2.000000e-01 : f32
    %8 = vector.broadcast %cst_6 : f32 to vector<8x128xf32>
    %9 = arith.mulf %8, %5 : vector<8x128xf32>
    %10 = arith.select %7, %5, %9 : vector<8x128xi1>, vector<8x128xf32>
    %c1 = arith.constant 1 : index
    %c0_7 = arith.constant 0 : index
    %11 = vector.load %arg3[%c1, %c0_7] : memref<3x128xf32, #tpu.memory_space<vmem>>, vector<1x128xf32>
    %12 = vector.broadcast %11 : vector<1x128xf32> to vector<8x128xf32>
    %13 = arith.mulf %10, %12 : vector<8x128xf32>
    %c2 = arith.constant 2 : index
    %c0_8 = arith.constant 0 : index
    %14 = vector.load %arg3[%c2, %c0_8] : memref<3x128xf32, #tpu.memory_space<vmem>>, vector<1x128xf32>
    %15 = vector.broadcast %14 : vector<1x128xf32> to vector<8x128xf32>
    %16 = arith.addf %13, %15 : vector<8x128xf32>
    %c0_9 = arith.constant 0 : index
    %c0_10 = arith.constant 0 : index
    %17 = vector.load %arg4[%c0_9, %c0_10] : memref<8x128xf32, #tpu.memory_space<vmem>>, vector<8x128xf32>
    tpu.vector_store %arg4[%c0_9, %c0_10], %16 {strides = array<i32>} : memref<8x128xf32, #tpu.memory_space<vmem>>, vector<8x128xf32>,
    return
  }
  func.func @transform_0(%arg0: i32) -> (i32, i32) {
    %c0_i32 = arith.constant 0 : i32
    %c0_i32_0 = arith.constant 0 : i32
    return %arg0, %c0_i32 : i32, i32
  }
  func.func @transform_1(%arg0: i32) -> (i32, i32) {
    %c0_i32 = arith.constant 0 : i32
    %c0_i32_0 = arith.constant 0 : i32
    %c0_i32_1 = arith.constant 0 : i32
    return %c0_i32, %c0_i32_0 : i32, i32
  }
  func.func @transform_2(%arg0: i32) -> (i32, i32) {
    %c0_i32 = arith.constant 0 : i32
    %c0_i32_0 = arith.constant 0 : i32
    %c0_i32_1 = arith.constant 0 : i32
    return %c0_i32, %c0_i32_0 : i32, i32
  }
  func.func @transform_3(%arg0: i32) -> (i32, i32) {
    %c0_i32 = arith.constant 0 : i32
    %c0_i32_0 = arith.constant 0 : i32
    return %arg0, %c0_i32 : i32, i32
  }
}

module attributes {stable_mosaic.version = 11 : i64} {
  func.func @_linear_kernel(%arg0: memref<2x128xf32, #tpu.memory_space<vmem>>, %arg1: memref<128x1xf32, #tpu.memory_space<vmem>>, %arg2: memref<1x1xf32, #tpu.memory_space<vmem>>, %arg3: memref<2x1xf32, #tpu.memory_space<vmem>>) attributes {dimension_semantics = [], scalar_prefetch = 0 : i64, scratch_operands = 0 : i64, tpu.core_type = #tpu.core_type<tc>} {
    %c0 = arith.constant 0 : index
    %c0_0 = arith.constant 0 : index
    %0 = vector.load %arg0[%c0, %c0_0] : memref<2x128xf32, #tpu.memory_space<vmem>>, vector<2x128xf32>
    %c0_1 = arith.constant 0 : index
    %c0_2 = arith.constant 0 : index
    %1 = vector.load %arg1[%c0_1, %c0_2] : memref<128x1xf32, #tpu.memory_space<vmem>>, vector<128x1xf32>
    %cst = arith.constant dense<0.000000e+00> : vector<2x1xf32>
    %2 = tpu.matmul %0, %1, %cst {dimension_numbers = #tpu.dot_dimension_numbers<[1], [0], [0], [1], [0, 0, 1, 1], [], []>} : vector<2x128xf32>, vector<128x1xf32>, vector<2x1xf32> -> vector<2x1xf32>
    %c0_3 = arith.constant 0 : index
    %c0_4 = arith.constant 0 : index
    %3 = vector.load %arg2[%c0_3, %c0_4] : memref<1x1xf32, #tpu.memory_space<vmem>>, vector<1x1xf32>
    %4 = vector.broadcast %3 : vector<1x1xf32> to vector<2x1xf32>
    %5 = arith.addf %2, %4 : vector<2x1xf32>
    %c0_5 = arith.constant 0 : index
    %c0_6 = arith.constant 0 : index
    %6 = vector.load %arg3[%c0_5, %c0_6] : memref<2x1xf32, #tpu.memory_space<vmem>>, vector<2x1xf32>
    tpu.vector_store %arg3[%c0_5, %c0_6], %5 {strides = array<i32>} : memref<2x1xf32, #tpu.memory_space<vmem>>, vector<2x1xf32>,
    return
  }
}

</mosaic_0001>

<bundles_post_ra>
// kernel: discriminator_forward.5
= control target key start
LH: loop header
LB: loop body
LE: loop exit
PB: predicated region body
PF: predicated region fallthrough
CT: control target
= control target key end

     0   :  { %vm335_vm2 = vcmask 130048   ;;  %s652_s1 = inlined_call_operand.vmem [shape: bf16[128,16], index: 1, kind: input, shape index: {}]   ;;  %s653_s0 = inlined_call_operand.vmem [shape: bf16[128,128], index: 0, kind: input, shape index: {}]   ;;  %s654_s2 = inlined_call_operand.vmem [shape: f32[3,16], index: 2, kind: input, shape index: {}]   ;;  %s655_s3 = inlined_call_operand.vmem [shape: f32[128,16], index: 3, kind: output, shape index: {}]  }
   0x1   :  { %v439_v0 = vld [vmem:[%s652_s1 + $0x38] sm:$0xff]   ;;  %v440_v1 = vld [vmem:[%s652_s1 + $0x30] sm:$0xff]   ;;  %v441_v2 = vld [vmem:[%s652_s1 + $0x28] sm:$0xff]  }
   0x2   :  { %391 = vmatprep.subr.bf16.mxu0 %v439_v0  ;;  %423 = vmatprep.subr.bf16.mxu1 %v439_v0  ;;  %v442_v3 = vld [vmem:[%s652_s1 + $0x20] sm:$0xff]   ;;  %v443_v6 = vld [vmem:[%s652_s1 + $0x18] sm:$0xff]   ;;  %v444_v7 = vld [vmem:[%s652_s1 + $0x10] sm:$0xff]  }
   0x3   :  { %392 = vmatpush3.bf16.msra.mxu0 %v439_v0  ;;  %431 = vmatpush3.bf16.msra.mxu1 %v439_v0  ;;  %v447_v4 = vld [vmem:[%s653_s0] sm:$0xff]   ;;  %v445_v8 = vld [vmem:[%s652_s1 + $0x8] sm:$0xff]   ;;  %v451_v12 = vld [vmem:[%s653_s0 + $0x10] sm:$0xff]  }
   0x4   :  { %393 = vmatprep.subr.bf16.mxu0 %v440_v1  ;;  %424 = vmatprep.subr.bf16.mxu1 %v440_v1  ;;  %v448_v5 = vld [vmem:[%s653_s0 + $0x20] sm:$0xff]   ;;  %v449_v10 = vld [vmem:[%s653_s0 + $0x8] sm:$0xff]   ;;  %v452_v13 = vld [vmem:[%s653_s0 + $0x30] sm:$0xff]  }
   0x5   :  { %407 = vmatprep.mubr.bf16.mxu0 %v447_v4  ;;  %415 = vmatprep.mubr.bf16.mxu1 %v448_v5  ;;  %v446_v9 = vld [vmem:[%s652_s1] sm:$0xff]   ;;  %v450_v11 = vld [vmem:[%s653_s0 + $0x28] sm:$0xff]   ;;  %v453_v14 = vld [vmem:[%s653_s0 + $0x18] sm:$0xff]  }
   0x6   :  { %v454_v15 = vld [vmem:[%s653_s0 + $0x38] sm:$0xff]   ;;  %v526_v16 = vld [vmem:[%s654_s2] ss:$0 sm:$0xff]  ;;  %v533_v21 = vld [vmem:[%s654_s2 + $0x1] ss:$0 sm:$0xff] }
   0x7   :  { %394 = vmatpush3.bf16.msra.mxu0 %v440_v1  ;;  %432 = vmatpush3.bf16.msra.mxu1 %v440_v1  ;;  %v540_v31 = vld [vmem:[%s654_s2 + $0x2] ss:$0 sm:$0xff] }
   0x8   :  { %395 = vmatprep.subr.bf16.mxu0 %v441_v2  ;;  %425 = vmatprep.subr.bf16.mxu1 %v441_v2 }
   0xb   :  { %396 = vmatpush3.bf16.msra.mxu0 %v441_v2  ;;  %433 = vmatpush3.bf16.msra.mxu1 %v441_v2 }
   0xc   :  { %397 = vmatprep.subr.bf16.mxu0 %v442_v3  ;;  %426 = vmatprep.subr.bf16.mxu1 %v442_v3 }
   0xf   :  { %398 = vmatpush3.bf16.msra.mxu0 %v442_v3  ;;  %434 = vmatpush3.bf16.msra.mxu1 %v442_v3 }
  0x10   :  { %399 = vmatprep.subr.bf16.mxu0 %v443_v6  ;;  %427 = vmatprep.subr.bf16.mxu1 %v443_v6 }
  0x13   :  { %400 = vmatpush3.bf16.msra.mxu0 %v443_v6  ;;  %435 = vmatpush3.bf16.msra.mxu1 %v443_v6 }
  0x14   :  { %401 = vmatprep.subr.bf16.mxu0 %v444_v7  ;;  %428 = vmatprep.subr.bf16.mxu1 %v444_v7 }
  0x17   :  { %402 = vmatpush3.bf16.msra.mxu0 %v444_v7  ;;  %436 = vmatpush3.bf16.msra.mxu1 %v444_v7 }
  0x18   :  { %403 = vmatprep.subr.bf16.mxu0 %v445_v8  ;;  %429 = vmatprep.subr.bf16.mxu1 %v445_v8 }
  0x1b   :  { %404 = vmatpush3.bf16.msra.mxu0 %v445_v8  ;;  %437 = vmatpush3.bf16.msra.mxu1 %v445_v8 }
  0x1c   :  { %405 = vmatprep.subr.bf16.mxu0 %v446_v9  ;;  %430 = vmatprep.subr.bf16.mxu1 %v446_v9 }
  0x1f   :  { %406 = vmatpush3.bf16.msra.mxu0 %v446_v9  ;;  %438 = vmatpush3.bf16.msra.mxu1 %v446_v9 }
  0x22   :  { %408 = vmatmul.mubr.bf16.vlgmr.msra.gmra.mxu0 %v449_v10  ;;  %416 = vmatmul.mubr.bf16.vlgmr.msra.gmra.mxu1 %v450_v11 }
  0x23   :  { %411 = vmatprep.mubr.bf16.mxu0 %v451_v12  ;;  %419 = vmatprep.mubr.bf16.mxu1 %v452_v13 }
  0x2a   :  { %412 = vmatmul.mubr.bf16.gmra.mxu0 %v453_v14  ;;  %420 = vmatmul.mubr.bf16.gmra.mxu1 %v454_v15 }
  0xe2   :  { %v409_v17 = vpop.f32.mrf.mxu0  ;;  %v417_v18 = vpop.f32.mrf.mxu1 }
  0xe3   :  { %v191_v19 = vadd.f32 %v409_v17, %v526_v16  ;;  %v223_v20 = vadd.f32 %v417_v18, %v526_v16 }
  0xe4   :  { %v182_v22 = vpop.f32.mrf.mxu0  ;;  %v214_v23 = vpop.f32.mrf.mxu1 }
  0xe5   :  { %vm247_vm0 = vcmp.ge.f32.partialorder %v191_v19, 0.0  ;;  %v263_v24 = vmul.f32 0.2, %v191_v19  ;;  %vm255_vm1 = vcmp.ge.f32.partialorder %v223_v20, 0.0  ;;  %v271_v25 = vmul.f32 0.2, %v223_v20 }
  0xe6   :  { %v183_v26 = vadd.f32 %v526_v16, %v182_v22  ;;  %v215_v27 = vadd.f32 %v526_v16, %v214_v23  ;;  %v410_v28 = vpop.f32.mrf.mxu0  ;;  %v418_v29 = vpop.f32.mrf.mxu1 }
  0xe7   :  { %v279_v30 = vsel %vm247_vm0, %v191_v19, %v263_v24  ;;  %v287_v32 = vsel %vm255_vm1, %v223_v20, %v271_v25  ;;  %v194_v33 = vadd.f32 %v410_v28, %v526_v16  ;;  %v226_v34 = vadd.f32 %v418_v29, %v526_v16 }
  0xe8   :  { %v300_v35 = vmul.f32 %v533_v21, %v279_v30  ;;  %v308_v36 = vmul.f32 %v533_v21, %v287_v32  ;;  %vm245_vm3 = vcmp.ge.f32.partialorder %v183_v26, 0.0  ;;  %v261_v37 = vmul.f32 0.2, %v183_v26  ;;  %v185_v38 = vpop.f32.mrf.mxu0  ;;  %v217_v39 = vpop.f32.mrf.mxu1 }
  0xe9   :  { %vm253_vm4 = vcmp.ge.f32.partialorder %v215_v27, 0.0  ;;  %v269_v40 = vmul.f32 0.2, %v215_v27  ;;  %vm248_vm5 = vcmp.ge.f32.partialorder %v194_v33, 0.0  ;;  %v264_v41 = vmul.f32 0.2, %v194_v33 }
  0xea   :  { %v321_v42 = vadd.f32 %v540_v31, %v300_v35  ;;  %v329_v43 = vadd.f32 %v540_v31, %v308_v36  ;;  %v277_v44 = vsel %vm245_vm3, %v183_v26, %v261_v37  ;;  %vm256_vm6 = vcmp.ge.f32.partialorder %v226_v34, 0.0  ;;  %v413_v45 = vpop.f32.mrf.mxu0  ;;  %v421_v46 = vpop.f32.mrf.mxu1 }
  0xeb   :  { %v298_v47 = vmul.f32 %v533_v21, %v277_v44  ;;  %v285_v48 = vsel %vm253_vm4, %v215_v27, %v269_v40  ;;  %v280_v49 = vsel %vm248_vm5, %v194_v33, %v264_v41  ;;  %v272_v50 = vmul.f32 0.2, %v226_v34 }
  0xec   :  { %338 = vst.msk [vmem:[%s655_s3 + $0x10] sm:$0xff] %vm335_vm2, %v321_v42  ;;  %346 = vst.msk [vmem:[%s655_s3 + $0x50] sm:$0xff] %vm335_vm2, %v329_v43  ;;  %v306_v51 = vmul.f32 %v533_v21, %v285_v48  ;;  %v301_v52 = vmul.f32 %v533_v21, %v280_v49  ;;  %v186_v53 = vadd.f32 %v526_v16, %v185_v38  ;;  %v198_v55 = vpop.f32.mrf.mxu0  ;;  %v230_v56 = vpop.f32.mrf.mxu1 }
  0xed   :  { %v218_v54 = vadd.f32 %v526_v16, %v217_v39  ;;  %v319_v57 = vadd.f32 %v540_v31, %v298_v47  ;;  %v288_v58 = vsel %vm256_vm6, %v226_v34, %v272_v50  ;;  %v207_v59 = vadd.f32 %v413_v45, %v526_v16 }
  0xee   :  { %v239_v60 = vadd.f32 %v421_v46, %v526_v16  ;;  %v327_v61 = vadd.f32 %v540_v31, %v306_v51  ;;  %v322_v62 = vadd.f32 %v540_v31, %v301_v52  ;;  %v309_v63 = vmul.f32 %v533_v21, %v288_v58  ;;  %v414_v2 = vpop.f32.mrf.mxu0  ;;  %v422_v6 = vpop.f32.mrf.mxu1 }
  0xef   :  { %vm246_vm7 = vcmp.ge.f32.partialorder %v186_v53, 0.0  ;;  %336 = vst.msk [vmem:[%s655_s3] sm:$0xff] %vm335_vm2, %v319_v57  ;;  %v262_v0 = vmul.f32 0.2, %v186_v53  ;;  %vm254_vm8 = vcmp.ge.f32.partialorder %v218_v54, 0.0  ;;  %vm251_vm9 = vcmp.ge.f32.partialorder %v207_v59, 0.0 }
  0xf0   :  { %v270_v1 = vmul.f32 0.2, %v218_v54  ;;  %344 = vst.msk [vmem:[%s655_s3 + $0x40] sm:$0xff] %vm335_vm2, %v327_v61  ;;  %339 = vst.msk [vmem:[%s655_s3 + $0x18] sm:$0xff] %vm335_vm2, %v322_v62  ;;  %v330_v3 = vadd.f32 %v540_v31, %v309_v63  ;;  %v267_v4 = vmul.f32 0.2, %v207_v59  ;;  %v199_v9 = vadd.f32 %v526_v16, %v198_v55  ;;  %v201_v19 = vpop.f32.mrf.mxu0  ;;  %v233_v24 = vpop.f32.mrf.mxu1 }
  0xf1   :  { %vm259_vm10 = vcmp.ge.f32.partialorder %v239_v60, 0.0  ;;  %v275_v5 = vmul.f32 0.2, %v239_v60  ;;  %v278_v7 = vsel %vm246_vm7, %v186_v53, %v262_v0  ;;  %v231_v10 = vadd.f32 %v526_v16, %v230_v56 }
  0xf2   :  { %v286_v8 = vsel %vm254_vm8, %v218_v54, %v270_v1  ;;  %347 = vst.msk [vmem:[%s655_s3 + $0x58] sm:$0xff] %vm335_vm2, %v330_v3  ;;  %v299_v11 = vmul.f32 %v533_v21, %v278_v7  ;;  %v283_v13 = vsel %vm251_vm9, %v207_v59, %v267_v4  ;;  %vm249_vm11 = vcmp.ge.f32.partialorder %v199_v9, 0.0 }
  0xf3   :  { %v307_v12 = vmul.f32 %v533_v21, %v286_v8  ;;  %v291_v14 = vsel %vm259_vm10, %v239_v60, %v275_v5  ;;  %v304_v15 = vmul.f32 %v533_v21, %v283_v13  ;;  %v265_v18 = vmul.f32 0.2, %v199_v9 }
  0xf4   :  { %v312_v17 = vmul.f32 %v533_v21, %v291_v14  ;;  %v320_v20 = vadd.f32 %v540_v31, %v299_v11  ;;  %vm257_vm12 = vcmp.ge.f32.partialorder %v231_v10, 0.0  ;;  %v273_v23 = vmul.f32 0.2, %v231_v10 }
  0xf5   :  { %v328_v22 = vadd.f32 %v540_v31, %v307_v12  ;;  %v325_v25 = vadd.f32 %v540_v31, %v304_v15  ;;  %v281_v27 = vsel %vm249_vm11, %v199_v9, %v265_v18  ;;  %v210_v28 = vadd.f32 %v414_v2, %v526_v16 }
  0xf6   :  { %v333_v26 = vadd.f32 %v540_v31, %v312_v17  ;;  %337 = vst.msk [vmem:[%s655_s3 + $0x8] sm:$0xff] %vm335_vm2, %v320_v20  ;;  %v302_v29 = vmul.f32 %v533_v21, %v281_v27  ;;  %v289_v30 = vsel %vm257_vm12, %v231_v10, %v273_v23  ;;  %v242_v32 = vadd.f32 %v422_v6, %v526_v16 }
  0xf7   :  { %345 = vst.msk [vmem:[%s655_s3 + $0x48] sm:$0xff] %vm335_vm2, %v328_v22  ;;  %v202_v33 = vadd.f32 %v526_v16, %v201_v19  ;;  %342 = vst.msk [vmem:[%s655_s3 + $0x30] sm:$0xff] %vm335_vm2, %v325_v25  ;;  %v310_v34 = vmul.f32 %v533_v21, %v289_v30  ;;  %vm252_vm13 = vcmp.ge.f32.partialorder %v210_v28, 0.0  ;;  %v268_v35 = vmul.f32 0.2, %v210_v28 }
  0xf8   :  { %350 = vst.msk [vmem:[%s655_s3 + $0x70] sm:$0xff] %vm335_vm2, %v333_v26  ;;  %v234_v36 = vadd.f32 %v526_v16, %v233_v24  ;;  %v323_v37 = vadd.f32 %v540_v31, %v302_v29  ;;  %vm260_vm14 = vcmp.ge.f32.partialorder %v242_v32, 0.0  ;;  %v276_v38 = vmul.f32 0.2, %v242_v32 }
  0xf9   :  { %vm250_vm15 = vcmp.ge.f32.partialorder %v202_v33, 0.0  ;;  %v331_v39 = vadd.f32 %v540_v31, %v310_v34  ;;  %v284_v40 = vsel %vm252_vm13, %v210_v28, %v268_v35  ;;  %v266_v41 = vmul.f32 0.2, %v202_v33 }
  0xfa   :  { %vm258_vm0 = vcmp.ge.f32.partialorder %v234_v36, 0.0  ;;  %340 = vst.msk [vmem:[%s655_s3 + $0x20] sm:$0xff] %vm335_vm2, %v323_v37  ;;  %v305_v42 = vmul.f32 %v533_v21, %v284_v40  ;;  %v292_v43 = vsel %vm260_vm14, %v242_v32, %v276_v38  ;;  %v274_v44 = vmul.f32 0.2, %v234_v36 }
  0xfb   :  { %348 = vst.msk [vmem:[%s655_s3 + $0x60] sm:$0xff] %vm335_vm2, %v331_v39  ;;  %v313_v16 = vmul.f32 %v533_v21, %v292_v43  ;;  %v282_v45 = vsel %vm250_vm15, %v202_v33, %v266_v41 }
  0xfc   :  { %v326_v46 = vadd.f32 %v540_v31, %v305_v42  ;;  %v303_v47 = vmul.f32 %v533_v21, %v282_v45  ;;  %v290_v48 = vsel %vm258_vm0, %v234_v36, %v274_v44 }
  0xfd   :  { %v334_v49 = vadd.f32 %v540_v31, %v313_v16  ;;  %v311_v50 = vmul.f32 %v533_v21, %v290_v48 }
  0xfe   :  { %343 = vst.msk [vmem:[%s655_s3 + $0x38] sm:$0xff] %vm335_vm2, %v326_v46  ;;  %v324_v51 = vadd.f32 %v540_v31, %v303_v47 }
  0xff   :  { %351 = vst.msk [vmem:[%s655_s3 + $0x78] sm:$0xff] %vm335_vm2, %v334_v49  ;;  %v332_v52 = vadd.f32 %v540_v31, %v311_v50 }
 0x100   :  { %341 = vst.msk [vmem:[%s655_s3 + $0x28] sm:$0xff] %vm335_vm2, %v324_v51 }
 0x101   :  { %349 = vst.msk [vmem:[%s655_s3 + $0x68] sm:$0xff] %vm335_vm2, %v332_v52 }

// kernel: discriminator_forward.6
= control target key start
LH: loop header
LB: loop body
LE: loop exit
PB: predicated region body
PF: predicated region fallthrough
CT: control target
= control target key end

     0   :  { %vm251_vm2 = vcmask 261120   ;;  %s454_s1 = inlined_call_operand.vmem [shape: bf16[256,32], index: 1, kind: input, shape index: {}]   ;;  %s455_s0 = inlined_call_operand.vmem [shape: bf16[32,256], index: 0, kind: input, shape index: {}]   ;;  %s456_s2 = inlined_call_operand.vmem [shape: f32[3,32], index: 2, kind: input, shape index: {}]   ;;  %s457_s3 = inlined_call_operand.vmem [shape: f32[32,32], index: 3, kind: output, shape index: {}]  }
   0x1   :  { %v327_v0 = vld [vmem:[%s454_s1 + $0x78] sm:$0xff]   ;;  %v329_v2 = vld [vmem:[%s454_s1 + $0x70] sm:$0xff]   ;;  %v331_v4 = vld [vmem:[%s454_s1 + $0x68] sm:$0xff]  }
   0x2   :  { %v328_v1 = vld [vmem:[%s454_s1 + $0x38] sm:$0xff]   ;;  %283 = vmatprep.subr.bf16.mxu0 %v327_v0  ;;  %311 = vmatprep.subr.bf16.mxu1 %v327_v0  ;;  %v330_v3 = vld [vmem:[%s454_s1 + $0x30] sm:$0xff]   ;;  %v332_v5 = vld [vmem:[%s454_s1 + $0x28] sm:$0xff]  }
   0x3   :  { %284 = vmatpush3.bf16.msra.mxu0 %v328_v1  ;;  %319 = vmatpush3.bf16.msra.mxu1 %v328_v1  ;;  %v333_v6 = vld [vmem:[%s454_s1 + $0x60] sm:$0xff]   ;;  %v335_v8 = vld [vmem:[%s454_s1 + $0x58] sm:$0xff]   ;;  %v337_v10 = vld [vmem:[%s454_s1 + $0x50] sm:$0xff]  }
   0x4   :  { %285 = vmatprep.subr.bf16.mxu0 %v329_v2  ;;  %312 = vmatprep.subr.bf16.mxu1 %v329_v2  ;;  %v334_v7 = vld [vmem:[%s454_s1 + $0x20] sm:$0xff]   ;;  %v336_v9 = vld [vmem:[%s454_s1 + $0x18] sm:$0xff]   ;;  %v338_v13 = vld [vmem:[%s454_s1 + $0x10] sm:$0xff]  }
   0x5   :  { %v345_v11 = vld [vmem:[%s455_s0 + $0x4] ss:$8 sps:$4 sm:$0xff]   ;;  %v348_v12 = vld [vmem:[%s455_s0 + $0x14] ss:$8 sps:$4 sm:$0xff]   ;;  %v343_v18 = vld [vmem:[%s455_s0] ss:$8 sps:$4 sm:$0xff]  }
   0x6   :  { %v339_v14 = vld [vmem:[%s454_s1 + $0x48] sm:$0xff]   ;;  %204 = vmatprep.mubr.bf16.mxu0 %v345_v11  ;;  %212 = vmatprep.mubr.bf16.mxu1 %v348_v12  ;;  %v341_v16 = vld [vmem:[%s454_s1 + $0x40] sm:$0xff]   ;;  %v346_v19 = vld [vmem:[%s455_s0 + $0x10] ss:$8 sps:$4 sm:$0xff]  }
   0x7   :  { %286 = vmatpush3.bf16.msra.mxu0 %v330_v3  ;;  %320 = vmatpush3.bf16.msra.mxu1 %v330_v3  ;;  %v340_v15 = vld [vmem:[%s454_s1 + $0x8] sm:$0xff]   ;;  %v342_v17 = vld [vmem:[%s454_s1] sm:$0xff]  }
   0x8   :  { %287 = vmatprep.subr.bf16.mxu0 %v331_v4  ;;  %313 = vmatprep.subr.bf16.mxu1 %v331_v4  ;;  %v260_v22 = vld [vmem:[%s456_s2] ss:$0 sm:$0xff]  ;;  %v281_v31 = vld [vmem:[%s456_s2 + $0x1] ss:$0 sm:$0xff]  ;;  %v282_v39 = vld [vmem:[%s456_s2 + $0x2] ss:$0 sm:$0xff] }
   0xb   :  { %288 = vmatpush3.bf16.msra.mxu0 %v332_v5  ;;  %321 = vmatpush3.bf16.msra.mxu1 %v332_v5 }
   0xc   :  { %289 = vmatprep.subr.bf16.mxu0 %v333_v6  ;;  %314 = vmatprep.subr.bf16.mxu1 %v333_v6 }
   0xf   :  { %290 = vmatpush3.bf16.msra.mxu0 %v334_v7  ;;  %322 = vmatpush3.bf16.msra.mxu1 %v334_v7 }
  0x10   :  { %291 = vmatprep.subr.bf16.mxu0 %v335_v8  ;;  %315 = vmatprep.subr.bf16.mxu1 %v335_v8 }
  0x13   :  { %292 = vmatpush3.bf16.msra.mxu0 %v336_v9  ;;  %323 = vmatpush3.bf16.msra.mxu1 %v336_v9 }
  0x14   :  { %293 = vmatprep.subr.bf16.mxu0 %v337_v10  ;;  %316 = vmatprep.subr.bf16.mxu1 %v337_v10 }
  0x17   :  { %294 = vmatpush3.bf16.msra.mxu0 %v338_v13  ;;  %324 = vmatpush3.bf16.msra.mxu1 %v338_v13 }
  0x18   :  { %295 = vmatprep.subr.bf16.mxu0 %v339_v14  ;;  %317 = vmatprep.subr.bf16.mxu1 %v339_v14 }
  0x1b   :  { %296 = vmatpush3.bf16.msra.mxu0 %v340_v15  ;;  %325 = vmatpush3.bf16.msra.mxu1 %v340_v15 }
  0x1c   :  { %297 = vmatprep.subr.bf16.mxu0 %v341_v16  ;;  %318 = vmatprep.subr.bf16.mxu1 %v341_v16 }
  0x1f   :  { %298 = vmatpush3.bf16.msra.mxu0 %v342_v17  ;;  %326 = vmatpush3.bf16.msra.mxu1 %v342_v17 }
  0x22   :  { %205 = vmatmul.mubr.bf16.vlgmr.msra.gmra.mxu0 %v343_v18  ;;  %213 = vmatmul.mubr.bf16.vlgmr.msra.gmra.mxu1 %v346_v19 }
  0xe2   :  { %v299_v20 = vpop.f32.mrf.mxu0  ;;  %v305_v21 = vpop.f32.mrf.mxu1 }
  0xe4   :  { %v300_v23 = vpop.f32.mrf.mxu0  ;;  %v306_v24 = vpop.f32.mrf.mxu1 }
  0xe5   :  { %v301_v25 = vadd.f32 %v300_v23, %v299_v20  ;;  %v307_v26 = vadd.f32 %v306_v24, %v305_v21 }
  0xe6   :  { %v302_v27 = vpop.f32.mrf.mxu0  ;;  %v308_v28 = vpop.f32.mrf.mxu1 }
  0xe7   :  { %v207_v29 = vadd.f32 %v301_v25, %v260_v22  ;;  %v215_v30 = vadd.f32 %v307_v26, %v260_v22 }
  0xe8   :  { %v303_v32 = vpop.f32.mrf.mxu0  ;;  %v309_v33 = vpop.f32.mrf.mxu1 }
  0xe9   :  { %vm221_vm0 = vcmp.ge.f32.partialorder %v207_v29, 0.0  ;;  %v225_v34 = vmul.f32 0.2, %v207_v29  ;;  %vm223_vm1 = vcmp.ge.f32.partialorder %v215_v30, 0.0  ;;  %v227_v35 = vmul.f32 0.2, %v215_v30 }
  0xea   :  { %v304_v36 = vadd.f32 %v303_v32, %v302_v27  ;;  %v310_v37 = vadd.f32 %v309_v33, %v308_v28 }
  0xeb   :  { %v229_v38 = vsel %vm221_vm0, %v207_v29, %v225_v34  ;;  %v231_v40 = vsel %vm223_vm1, %v215_v30, %v227_v35 }
  0xec   :  { %v238_v41 = vmul.f32 %v281_v31, %v229_v38  ;;  %v240_v42 = vmul.f32 %v281_v31, %v231_v40  ;;  %v210_v43 = vadd.f32 %v304_v36, %v260_v22  ;;  %v218_v44 = vadd.f32 %v310_v37, %v260_v22 }
  0xee   :  { %v247_v45 = vadd.f32 %v282_v39, %v238_v41  ;;  %v249_v46 = vadd.f32 %v282_v39, %v240_v42  ;;  %vm222_vm3 = vcmp.ge.f32.partialorder %v210_v43, 0.0  ;;  %v226_v47 = vmul.f32 0.2, %v210_v43 }
  0xef   :  { %vm224_vm4 = vcmp.ge.f32.partialorder %v218_v44, 0.0  ;;  %v228_v48 = vmul.f32 0.2, %v218_v44 }
  0xf0   :  { %252 = vst.msk [vmem:[%s457_s3] sm:$0xff] %vm251_vm2, %v247_v45  ;;  %254 = vst.msk [vmem:[%s457_s3 + $0x10] sm:$0xff] %vm251_vm2, %v249_v46  ;;  %v230_v49 = vsel %vm222_vm3, %v210_v43, %v226_v47 }
  0xf1   :  { %v239_v50 = vmul.f32 %v281_v31, %v230_v49  ;;  %v232_v51 = vsel %vm224_vm4, %v218_v44, %v228_v48 }
  0xf2   :  { %v241_v52 = vmul.f32 %v281_v31, %v232_v51 }
  0xf3   :  { %v248_v53 = vadd.f32 %v282_v39, %v239_v50 }
  0xf4   :  { %v250_v54 = vadd.f32 %v282_v39, %v241_v52 }
  0xf5   :  { %253 = vst.msk [vmem:[%s457_s3 + $0x8] sm:$0xff] %vm251_vm2, %v248_v53 }
  0xf6   :  { %255 = vst.msk [vmem:[%s457_s3 + $0x18] sm:$0xff] %vm251_vm2, %v250_v54 }

// kernel: discriminator_forward.9
= control target key start
LH: loop header
LB: loop body
LE: loop exit
PB: predicated region body
PF: predicated region fallthrough
CT: control target
= control target key end

     0   :  { %v171_v0 = vmov 0.0   ;;  %vm172_vm0 = vmmov 0   ;;  %vm110_vm1 = vcmask 1024   ;;  %s250_s1 = inlined_call_operand.vmem [shape: f32[128,1], index: 1, kind: input, shape index: {}]   ;;  %s251_s2 = inlined_call_operand.<no memory space> [shape: f32[1,1], index: 2, kind: input, shape index: {}]   ;;  %s252_s0 = inlined_call_operand.vmem [shape: f32[2,128], index: 0, kind: input, shape index: {}]   ;;  %s253_s3 = inlined_call_operand.vmem [shape: f32[2,1], index: 3, kind: output, shape index: {}]  }
   0x1   :  { %134 = vmatprep.subr.mxu0 %v171_v0  ;;  %v32_v1 = vld [vmem:[%s250_s1 + $0x78] sm:$0xff]  ;;  %v31_v2 = vld [vmem:[%s250_s1 + $0x70] sm:$0xff]  ;;  %166 = vmatprep.mubr.msk.f32.mxu0 %vm172_vm0, %v171_v0  ;;  %v8_v3 = vstv %s251_s2  ;;  %v30_v4 = vld [vmem:[%s250_s1 + $0x68] sm:$0xff] }
   0x2   :  { %135 = vmatpush3.msra.mxu0 %v32_v1  ;;  %9 = vst [vmem:[#allocation2] sm:$0x1] %v8_v3  ;;  %v29_v5 = vld [vmem:[%s250_s1 + $0x60] sm:$0xff]  ;;  %v28_v6 = vld [vmem:[%s250_s1 + $0x58] sm:$0xff]  ;;  %v27_v7 = vld [vmem:[%s250_s1 + $0x50] sm:$0xff] }
   0x3   :  { %136 = vmatprep.subr.mxu0 %v171_v0  ;;  %v26_v8 = vld [vmem:[%s250_s1 + $0x48] sm:$0xff]  ;;  %v25_v9 = vld [vmem:[%s250_s1 + $0x40] sm:$0xff]  ;;  %v24_v10 = vld [vmem:[%s250_s1 + $0x38] sm:$0xff] }
   0x4   :  { %137 = vmatpush3.msra.mxu0 %v31_v2  ;;  %v23_v11 = vld [vmem:[%s250_s1 + $0x30] sm:$0xff]  ;;  %v22_v12 = vld [vmem:[%s250_s1 + $0x28] sm:$0xff]  ;;  %v21_v13 = vld [vmem:[%s250_s1 + $0x20] sm:$0xff] }
   0x5   :  { %138 = vmatprep.subr.mxu0 %v171_v0  ;;  %v20_v14 = vld [vmem:[%s250_s1 + $0x18] sm:$0xff]  ;;  %v19_v15 = vld [vmem:[%s250_s1 + $0x10] sm:$0xff]  ;;  %v18_v16 = vld [vmem:[%s250_s1 + $0x8] sm:$0xff] }
   0x6   :  { %139 = vmatpush3.msra.mxu0 %v30_v4  ;;  %v17_v17 = vld [vmem:[%s250_s1] sm:$0xff] }
   0x7   :  { %140 = vmatprep.subr.mxu0 %v171_v0  ;;  %v16_v18 = vld [vmem:[%s252_s0] sm:$0x3] }
   0x8   :  { %141 = vmatpush3.msra.mxu0 %v29_v5 }
   0x9   :  { %142 = vmatprep.subr.mxu0 %v171_v0  ;;  %v116_v19 = vld [vmem:[#allocation2] ss:$0 sm:$0xff] }
   0xa   :  { %143 = vmatpush3.msra.mxu0 %v28_v6 }
   0xb   :  { %144 = vmatprep.subr.mxu0 %v171_v0 }
   0xc   :  { %145 = vmatpush3.msra.mxu0 %v27_v7 }
   0xd   :  { %146 = vmatprep.subr.mxu0 %v171_v0 }
   0xe   :  { %147 = vmatpush3.msra.mxu0 %v26_v8 }
   0xf   :  { %148 = vmatprep.subr.mxu0 %v171_v0 }
  0x10   :  { %149 = vmatpush3.msra.mxu0 %v25_v9 }
  0x11   :  { %150 = vmatprep.subr.mxu0 %v171_v0 }
  0x12   :  { %151 = vmatpush3.msra.mxu0 %v24_v10 }
  0x13   :  { %152 = vmatprep.subr.mxu0 %v171_v0 }
  0x14   :  { %153 = vmatpush3.msra.mxu0 %v23_v11 }
  0x15   :  { %154 = vmatprep.subr.mxu0 %v171_v0 }
  0x16   :  { %155 = vmatpush3.msra.mxu0 %v22_v12 }
  0x17   :  { %156 = vmatprep.subr.mxu0 %v171_v0 }
  0x18   :  { %157 = vmatpush3.msra.mxu0 %v21_v13 }
  0x19   :  { %158 = vmatprep.subr.mxu0 %v171_v0 }
  0x1a   :  { %159 = vmatpush3.msra.mxu0 %v20_v14 }
  0x1b   :  { %160 = vmatprep.subr.mxu0 %v171_v0 }
  0x1c   :  { %161 = vmatpush3.msra.mxu0 %v19_v15 }
  0x1d   :  { %162 = vmatprep.subr.mxu0 %v171_v0 }
  0x1e   :  { %163 = vmatpush3.msra.mxu0 %v18_v16 }
  0x1f   :  { %164 = vmatprep.subr.mxu0 %v171_v0 }
  0x20   :  { %165 = vmatpush3.msra.mxu0 %v17_v17 }
  0x21   :  { %167 = vmatmul.mubr.f32.vlgmr.msra.gmra.mxu0 %v16_v18 }
  0xe1   :  { %v106_v20 = vpop.f32.mrf.mxu0 }
  0xe2   :  { %v107_v21 = vadd.f32 %v116_v19, %v106_v20 }
  0xe3   :  { %v168_v22 = vpop.f32.mrf.mxu0 }
  0xe4   :  { %111 = vst.msk [vmem:[%s253_s3] sm:$0x3] %vm110_vm1, %v107_v21 }

// kernel: discriminator_forward.7
= control target key start
LH: loop header
LB: loop body
LE: loop exit
PB: predicated region body
PF: predicated region fallthrough
CT: control target
= control target key end

     0   :  { %v436_v1 = vmov 0.0   ;;  %vm437_vm0 = vmmov 0   ;;  %vm320_vm2 = vcmask 523264   ;;  %s548_s1 = inlined_call_operand.vmem [shape: bf16[384,64], index: 1, kind: input, shape index: {}]   ;;  %s549_s0 = inlined_call_operand.vmem [shape: bf16[8,384], index: 0, kind: input, shape index: {}]   ;;  %s550_s2 = inlined_call_operand.vmem [shape: f32[3,64], index: 2, kind: input, shape index: {}]   ;;  %s551_s3 = inlined_call_operand.vmem [shape: f32[8,64], index: 3, kind: output, shape index: {}]  }
   0x1   :  { %v409_v0 = vld [vmem:[%s548_s1 + $0x78] sm:$0xff]   ;;  %387 = vmatprep.subr.bf16.mxu1 %v436_v1  ;;  %403 = vmatprep.mubr.msk.bf16.mxu1 %vm437_vm0, %v436_v1  ;;  %v412_v4 = vld [vmem:[%s548_s1 + $0x70] sm:$0xff]   ;;  %v415_v7 = vld [vmem:[%s548_s1 + $0x68] sm:$0xff]  }
   0x2   :  { %v410_v2 = vld [vmem:[%s548_s1 + $0x38] sm:$0xff]   ;;  %356 = vmatprep.subr.bf16.mxu0 %v409_v0  ;;  %v413_v5 = vld [vmem:[%s548_s1 + $0x30] sm:$0xff]   ;;  %v416_v8 = vld [vmem:[%s548_s1 + $0x28] sm:$0xff]  }
   0x3   :  { %v411_v3 = vld [vmem:[%s548_s1 + $0xb8] sm:$0xff]   ;;  %357 = vmatpush3.bf16.msra.mxu0 %v410_v2  ;;  %v414_v6 = vld [vmem:[%s548_s1 + $0xb0] sm:$0xff]   ;;  %v417_v9 = vld [vmem:[%s548_s1 + $0xa8] sm:$0xff]  }
   0x4   :  { %388 = vmatpush3.bf16.msra.mxu1 %v411_v3  ;;  %358 = vmatprep.subr.bf16.mxu0 %v412_v4  ;;  %v418_v10 = vld [vmem:[%s548_s1 + $0x60] sm:$0xff]   ;;  %v421_v13 = vld [vmem:[%s548_s1 + $0x58] sm:$0xff]   ;;  %v424_v16 = vld [vmem:[%s548_s1 + $0x50] sm:$0xff]  }
   0x5   :  { %389 = vmatprep.subr.bf16.mxu1 %v436_v1  ;;  %v419_v11 = vld [vmem:[%s548_s1 + $0x20] sm:$0xff]   ;;  %v422_v14 = vld [vmem:[%s548_s1 + $0x18] sm:$0xff]   ;;  %v425_v17 = vld [vmem:[%s548_s1 + $0x10] sm:$0xff]  }
   0x6   :  { %v420_v12 = vld [vmem:[%s548_s1 + $0xa0] sm:$0xff]   ;;  %v423_v15 = vld [vmem:[%s548_s1 + $0x98] sm:$0xff]   ;;  %v426_v18 = vld [vmem:[%s548_s1 + $0x90] sm:$0xff]  }
   0x7   :  { %359 = vmatpush3.bf16.msra.mxu0 %v413_v5  ;;  %v427_v19 = vld [vmem:[%s548_s1 + $0x48] sm:$0xff]   ;;  %v430_v22 = vld [vmem:[%s548_s1 + $0x40] sm:$0xff]  }
   0x8   :  { %390 = vmatpush3.bf16.msra.mxu1 %v414_v6  ;;  %360 = vmatprep.subr.bf16.mxu0 %v415_v7  ;;  %v428_v20 = vld [vmem:[%s548_s1 + $0x8] sm:$0xff]   ;;  %v15_v23 = vld [vmem:[%s549_s0] sm:$0xff] }
   0x9   :  { %391 = vmatprep.subr.bf16.mxu1 %v436_v1  ;;  %v429_v21 = vld [vmem:[%s548_s1 + $0x88] sm:$0xff]   ;;  %v328_v24 = vcombine.high %v15_v23, %v15_v23  ;;  %v431_v25 = vld [vmem:[%s548_s1] sm:$0xff]   ;;  %v327_v27 = vcombine.low %v15_v23, %v15_v23 }
   0xa   :  { %v432_v26 = vld [vmem:[%s548_s1 + $0x80] sm:$0xff]   ;;  %v435_v28 = vld [vmem:[%s549_s0 + $0x8] ss:$0 sps:$4 sm:$0xff]  }
   0xb   :  { %361 = vmatpush3.bf16.msra.mxu0 %v416_v8  ;;  %257 = vmatprep.mubr.bf16.mxu0 %v328_v24  ;;  %v326_v31 = vld [vmem:[%s550_s2] ss:$0 sm:$0xff]  ;;  %v354_v42 = vld [vmem:[%s550_s2 + $0x1] ss:$0 sm:$0xff]  ;;  %v355_v44 = vld [vmem:[%s550_s2 + $0x2] ss:$0 sm:$0xff] }
   0xc   :  { %392 = vmatpush3.bf16.msra.mxu1 %v417_v9  ;;  %362 = vmatprep.subr.bf16.mxu0 %v418_v10 }
   0xd   :  { %393 = vmatprep.subr.bf16.mxu1 %v436_v1 }
   0xf   :  { %363 = vmatpush3.bf16.msra.mxu0 %v419_v11 }
  0x10   :  { %394 = vmatpush3.bf16.msra.mxu1 %v420_v12  ;;  %364 = vmatprep.subr.bf16.mxu0 %v421_v13 }
  0x11   :  { %395 = vmatprep.subr.bf16.mxu1 %v436_v1 }
  0x13   :  { %365 = vmatpush3.bf16.msra.mxu0 %v422_v14 }
  0x14   :  { %396 = vmatpush3.bf16.msra.mxu1 %v423_v15  ;;  %366 = vmatprep.subr.bf16.mxu0 %v424_v16 }
  0x15   :  { %397 = vmatprep.subr.bf16.mxu1 %v436_v1 }
  0x17   :  { %367 = vmatpush3.bf16.msra.mxu0 %v425_v17 }
  0x18   :  { %398 = vmatpush3.bf16.msra.mxu1 %v426_v18  ;;  %368 = vmatprep.subr.bf16.mxu0 %v427_v19 }
  0x19   :  { %399 = vmatprep.subr.bf16.mxu1 %v436_v1 }
  0x1b   :  { %369 = vmatpush3.bf16.msra.mxu0 %v428_v20 }
  0x1c   :  { %400 = vmatpush3.bf16.msra.mxu1 %v429_v21  ;;  %370 = vmatprep.subr.bf16.mxu0 %v430_v22 }
  0x1d   :  { %401 = vmatprep.subr.bf16.mxu1 %v436_v1 }
  0x1f   :  { %371 = vmatpush3.bf16.msra.mxu0 %v431_v25 }
  0x20   :  { %402 = vmatpush3.bf16.msra.mxu1 %v432_v26 }
  0x22   :  { %258 = vmatmul.mubr.bf16.vlgmr.msra.gmra.mxu0 %v327_v27 }
  0x23   :  { %404 = vmatmul.mubr.bf16.vlgmr.msra.gmra.mxu1 %v435_v28 }
  0xe2   :  { %v372_v29 = vpop.f32.mrf.mxu0 }
  0xe3   :  { %v299_v30 = vpop.f32.mrf.mxu1 }
  0xe4   :  { %v373_v32 = vpop.f32.mrf.mxu0 }
  0xe5   :  { %v374_v33 = vadd.f32 %v373_v32, %v372_v29  ;;  %v405_v34 = vpop.f32.mrf.mxu1 }
  0xe6   :  { %v375_v35 = vpop.f32.mrf.mxu0 }
  0xe7   :  { %v260_v36 = vadd.f32 %v374_v33, %v326_v31  ;;  %v302_v37 = vpop.f32.mrf.mxu1 }
  0xe8   :  { %v376_v38 = vpop.f32.mrf.mxu0 }
  0xe9   :  { %v300_v39 = vadd.f32 %v299_v30, %v260_v36  ;;  %v406_v40 = vpop.f32.mrf.mxu1 }
  0xeb   :  { %vm305_vm1 = vcmp.ge.f32.partialorder %v300_v39, 0.0  ;;  %v306_v41 = vmul.f32 0.2, %v300_v39 }
  0xed   :  { %v307_v43 = vsel %vm305_vm1, %v300_v39, %v306_v41 }
  0xee   :  { %v313_v45 = vmul.f32 %v354_v42, %v307_v43 }
  0xf0   :  { %v319_v46 = vadd.f32 %v355_v44, %v313_v45 }
  0xf2   :  { %321 = vst.msk [vmem:[%s551_s3] sm:$0xff] %vm320_vm2, %v319_v46 }

// kernel: discriminator_forward.8
= control target key start
LH: loop header
LB: loop body
LE: loop exit
PB: predicated region body
PF: predicated region fallthrough
CT: control target
= control target key end

     0   :  { %v669_v35 = vmov 0.0   ;;  %vm670_vm0 = vmmov 0   ;;  %s832_s1 = inlined_call_operand.vmem [shape: bf16[640,128], index: 1, kind: input, shape index: {}]   ;;  %s833_s0 = inlined_call_operand.vmem [shape: bf16[8,640], index: 0, kind: input, shape index: {}]   ;;  %s834_s2 = inlined_call_operand.vmem [shape: f32[3,128], index: 2, kind: input, shape index: {}]   ;;  %s835_s3 = inlined_call_operand.vmem [shape: f32[8,128], index: 3, kind: output, shape index: {}]  }
   0x1   :  { %v624_v0 = vld [vmem:[%s832_s1 + $0x78] sm:$0xff]   ;;  %v628_v4 = vld [vmem:[%s832_s1 + $0x70] sm:$0xff]   ;;  %v632_v8 = vld [vmem:[%s832_s1 + $0x68] sm:$0xff]  }
   0x2   :  { %v625_v1 = vld [vmem:[%s832_s1 + $0x38] sm:$0xff]   ;;  %549 = vmatprep.subr.bf16.mxu0 %v624_v0  ;;  %v629_v5 = vld [vmem:[%s832_s1 + $0x30] sm:$0xff]   ;;  %v633_v9 = vld [vmem:[%s832_s1 + $0x28] sm:$0xff]  }
   0x3   :  { %v626_v2 = vld [vmem:[%s832_s1 + $0xf8] sm:$0xff]   ;;  %550 = vmatpush3.bf16.msra.mxu0 %v625_v1  ;;  %v630_v6 = vld [vmem:[%s832_s1 + $0xf0] sm:$0xff]   ;;  %v634_v10 = vld [vmem:[%s832_s1 + $0xe8] sm:$0xff]  }
   0x4   :  { %v627_v3 = vld [vmem:[%s832_s1 + $0xb8] sm:$0xff]   ;;  %571 = vmatprep.subr.bf16.mxu1 %v626_v2  ;;  %551 = vmatprep.subr.bf16.mxu0 %v628_v4  ;;  %v631_v7 = vld [vmem:[%s832_s1 + $0xb0] sm:$0xff]   ;;  %v635_v11 = vld [vmem:[%s832_s1 + $0xa8] sm:$0xff]  }
   0x5   :  { %572 = vmatpush3.bf16.msra.mxu1 %v627_v3  ;;  %v636_v12 = vld [vmem:[%s832_s1 + $0x60] sm:$0xff]   ;;  %v640_v16 = vld [vmem:[%s832_s1 + $0x58] sm:$0xff]   ;;  %v644_v20 = vld [vmem:[%s832_s1 + $0x50] sm:$0xff]  }
   0x6   :  { %573 = vmatprep.subr.bf16.mxu1 %v630_v6  ;;  %v637_v13 = vld [vmem:[%s832_s1 + $0x20] sm:$0xff]   ;;  %v641_v17 = vld [vmem:[%s832_s1 + $0x18] sm:$0xff]   ;;  %v645_v21 = vld [vmem:[%s832_s1 + $0x10] sm:$0xff]  }
   0x7   :  { %552 = vmatpush3.bf16.msra.mxu0 %v629_v5  ;;  %v638_v14 = vld [vmem:[%s832_s1 + $0xe0] sm:$0xff]   ;;  %v642_v18 = vld [vmem:[%s832_s1 + $0xd8] sm:$0xff]   ;;  %v646_v22 = vld [vmem:[%s832_s1 + $0xd0] sm:$0xff]  }
   0x8   :  { %553 = vmatprep.subr.bf16.mxu0 %v632_v8  ;;  %v639_v15 = vld [vmem:[%s832_s1 + $0xa0] sm:$0xff]   ;;  %v643_v19 = vld [vmem:[%s832_s1 + $0x98] sm:$0xff]   ;;  %v647_v23 = vld [vmem:[%s832_s1 + $0x90] sm:$0xff]  }
   0x9   :  { %574 = vmatpush3.bf16.msra.mxu1 %v631_v7  ;;  %v648_v24 = vld [vmem:[%s832_s1 + $0x48] sm:$0xff]   ;;  %v652_v28 = vld [vmem:[%s832_s1 + $0x40] sm:$0xff]   ;;  %v661_v39 = vld [vmem:[%s832_s1 + $0x138] sm:$0xff]  }
   0xa   :  { %575 = vmatprep.subr.bf16.mxu1 %v634_v10  ;;  %v649_v25 = vld [vmem:[%s832_s1 + $0x8] sm:$0xff]   ;;  %v653_v29 = vld [vmem:[%s832_s1] sm:$0xff]   ;;  %v662_v40 = vld [vmem:[%s832_s1 + $0x130] sm:$0xff]  }
   0xb   :  { %554 = vmatpush3.bf16.msra.mxu0 %v633_v9  ;;  %v650_v26 = vld [vmem:[%s832_s1 + $0xc8] sm:$0xff]   ;;  %v654_v30 = vld [vmem:[%s832_s1 + $0xc0] sm:$0xff]   ;;  %v665_v43 = vld [vmem:[%s832_s1 + $0x118] sm:$0xff]  }
   0xc   :  { %555 = vmatprep.subr.bf16.mxu0 %v636_v12  ;;  %v651_v27 = vld [vmem:[%s832_s1 + $0x88] sm:$0xff]   ;;  %v15_v31 = vld [vmem:[%s833_s0] sm:$0xff]  ;;  %v666_v44 = vld [vmem:[%s832_s1 + $0x110] sm:$0xff]  }
   0xd   :  { %576 = vmatpush3.bf16.msra.mxu1 %v635_v11  ;;  %v502_v32 = vcombine.low %v15_v31, %v15_v31  ;;  %v503_v33 = vcombine.high %v15_v31, %v15_v31  ;;  %v658_v34 = vld [vmem:[%s832_s1 + $0x80] sm:$0xff]   ;;  %v16_v36 = vld [vmem:[%s833_s0 + $0x8] sm:$0xff]  ;;  %v657_v47 = vld [vmem:[%s833_s0 + $0x10] ss:$0 sps:$4 sm:$0xff]  }
   0xe   :  { %577 = vmatprep.subr.bf16.mxu1 %v638_v14  ;;  %v504_v37 = vcombine.low %v16_v36, %v16_v36  ;;  %v505_v38 = vcombine.high %v16_v36, %v16_v36  ;;  %v663_v41 = vld [vmem:[%s832_s1 + $0x128] sm:$0xff]   ;;  %v664_v42 = vld [vmem:[%s832_s1 + $0x120] sm:$0xff]  }
   0xf   :  { %556 = vmatpush3.bf16.msra.mxu0 %v637_v13  ;;  %393 = vmatprep.mubr.bf16.mxu0 %v503_v33  ;;  %v667_v45 = vld [vmem:[%s832_s1 + $0x108] sm:$0xff]   ;;  %v668_v46 = vld [vmem:[%s832_s1 + $0x100] sm:$0xff]  }
  0x10   :  { %557 = vmatprep.subr.bf16.mxu0 %v640_v16  ;;  %433 = vmatprep.mubr.bf16.mxu1 %v505_v38  ;;  %v501_v57 = vld [vmem:[%s834_s2] ss:$0 sm:$0xff]  ;;  %v547_v1 = vld [vmem:[%s834_s2 + $0x1] ss:$0 sm:$0xff]  ;;  %v548_v3 = vld [vmem:[%s834_s2 + $0x2] ss:$0 sm:$0xff] }
  0x11   :  { %578 = vmatpush3.bf16.msra.mxu1 %v639_v15 }
  0x12   :  { %579 = vmatprep.subr.bf16.mxu1 %v642_v18 }
  0x13   :  { %558 = vmatpush3.bf16.msra.mxu0 %v641_v17 }
  0x14   :  { %559 = vmatprep.subr.bf16.mxu0 %v644_v20 }
  0x15   :  { %580 = vmatpush3.bf16.msra.mxu1 %v643_v19 }
  0x16   :  { %581 = vmatprep.subr.bf16.mxu1 %v646_v22 }
  0x17   :  { %560 = vmatpush3.bf16.msra.mxu0 %v645_v21 }
  0x18   :  { %561 = vmatprep.subr.bf16.mxu0 %v648_v24 }
  0x19   :  { %582 = vmatpush3.bf16.msra.mxu1 %v647_v23 }
  0x1a   :  { %583 = vmatprep.subr.bf16.mxu1 %v650_v26 }
  0x1b   :  { %562 = vmatpush3.bf16.msra.mxu0 %v649_v25 }
  0x1c   :  { %563 = vmatprep.subr.bf16.mxu0 %v652_v28 }
  0x1d   :  { %584 = vmatpush3.bf16.msra.mxu1 %v651_v27 }
  0x1e   :  { %585 = vmatprep.subr.bf16.mxu1 %v654_v30 }
  0x1f   :  { %564 = vmatpush3.bf16.msra.mxu0 %v653_v29 }
  0x20   :  { %602 = vmatprep.subr.bf16.mxu0 %v669_v35 }
  0x21   :  { %586 = vmatpush3.bf16.msra.mxu1 %v658_v34 }
  0x22   :  { %394 = vmatmul.mubr.bf16.vlgmr.msra.gmra.mxu0 %v502_v32 }
  0x23   :  { %603 = vmatpush3.bf16.msra.mxu0 %v661_v39  ;;  %618 = vmatprep.mubr.msk.bf16.mxu0 %vm670_vm0, %v669_v35 }
  0x24   :  { %434 = vmatmul.mubr.bf16.vlgmr.msra.gmra.mxu1 %v504_v37  ;;  %604 = vmatprep.subr.bf16.mxu0 %v669_v35 }
  0x27   :  { %605 = vmatpush3.bf16.msra.mxu0 %v662_v40 }
  0x28   :  { %606 = vmatprep.subr.bf16.mxu0 %v669_v35 }
  0x2b   :  { %607 = vmatpush3.bf16.msra.mxu0 %v663_v41 }
  0x2c   :  { %608 = vmatprep.subr.bf16.mxu0 %v669_v35 }
  0x2f   :  { %609 = vmatpush3.bf16.msra.mxu0 %v664_v42 }
  0x30   :  { %610 = vmatprep.subr.bf16.mxu0 %v669_v35 }
  0x33   :  { %611 = vmatpush3.bf16.msra.mxu0 %v665_v43 }
  0x34   :  { %612 = vmatprep.subr.bf16.mxu0 %v669_v35 }
  0x37   :  { %613 = vmatpush3.bf16.msra.mxu0 %v666_v44 }
  0x38   :  { %614 = vmatprep.subr.bf16.mxu0 %v669_v35 }
  0x3b   :  { %615 = vmatpush3.bf16.msra.mxu0 %v667_v45 }
  0x3c   :  { %616 = vmatprep.subr.bf16.mxu0 %v669_v35 }
  0x3f   :  { %617 = vmatpush3.bf16.msra.mxu0 %v668_v46 }
  0x42   :  { %619 = vmatmul.mubr.bf16.vlgmr.msra.gmra.mxu0 %v657_v47 }
  0xe2   :  { %v565_v48 = vpop.f32.mrf.mxu0 }
  0xe4   :  { %v566_v49 = vpop.f32.mrf.mxu0  ;;  %v587_v50 = vpop.f32.mrf.mxu1 }
  0xe5   :  { %v567_v56 = vadd.f32 %v566_v49, %v565_v48 }
  0xe6   :  { %v568_v51 = vpop.f32.mrf.mxu0  ;;  %v588_v52 = vpop.f32.mrf.mxu1 }
  0xe7   :  { %v396_v58 = vadd.f32 %v567_v56, %v501_v57  ;;  %v589_v59 = vadd.f32 %v588_v52, %v587_v50 }
  0xe8   :  { %v569_v53 = vpop.f32.mrf.mxu0  ;;  %v590_v54 = vpop.f32.mrf.mxu1 }
  0xe9   :  { %v436_v60 = vadd.f32 %v589_v59, %v396_v58 }
  0xea   :  { %v591_v55 = vpop.f32.mrf.mxu1 }
 0x102   :  { %v475_v61 = vpop.f32.mrf.mxu0 }
 0x103   :  { %v476_v62 = vadd.f32 %v475_v61, %v436_v60 }
 0x104   :  { %v620_v63 = vpop.f32.mrf.mxu0 }
 0x105   :  { %vm481_vm1 = vcmp.ge.f32.partialorder %v476_v62, 0.0  ;;  %v482_v0 = vmul.f32 0.2, %v476_v62 }
 0x106   :  { %v478_v2 = vpop.f32.mrf.mxu0 }
 0x107   :  { %v483_v4 = vsel %vm481_vm1, %v476_v62, %v482_v0 }
 0x108   :  { %v489_v5 = vmul.f32 %v547_v1, %v483_v4  ;;  %v621_v6 = vpop.f32.mrf.mxu0 }
 0x10a   :  { %v495_v7 = vadd.f32 %v548_v3, %v489_v5 }
 0x10c   :  { %496 = vst [vmem:[%s835_s3] sm:$0xff] %v495_v7 }

</bundles_post_ra>
